<compile_context>
chip_gen: v5e
topology: v5e:2x2
jax: 0.10.0
libtpu: 0.0.40
codegen_flags: <defaults>
</compile_context>

<pallas_src>
import functools

import jax
import jax.numpy as jnp
from jax import lax
from jax.experimental import pallas as pl
from jax.experimental.pallas import tpu as pltpu


# --------------------------------------------------------------------------
# small helpers
# --------------------------------------------------------------------------
def _round_up(x, m):
    return (x + m - 1) // m * m


def _pad2d(a, rows, cols):
    r, c = a.shape
    if r == rows and c == cols:
        return a
    return jnp.pad(a, ((0, rows - r), (0, cols - c)))


def _pick_tiles(M, N, K):
    TM = min(512, _round_up(M, 16))          # bf16 sublane packing -> mult of 16
    Mp = _round_up(M, TM)
    Np = _round_up(N, 128)                   # lane-dense output channels
    TN = 256 if Np % 256 == 0 else 128
    Kp = _round_up(K, 128)
    if Kp > 2048:                            # tile the reduction only when big
        TK = 512
        Kp = _round_up(Kp, TK)
    else:
        TK = Kp
    return TM, TN, TK, Mp, Np, Kp


def _compiler_params(dim_sem, vmem_need_bytes):
    # Budget 2x (double buffering) already included by caller; clamp so the
    # request is valid on v7x (64 MiB physical VMEM) yet above v5e's 16 MiB
    # default scoped limit.
    limit = int(min(max(vmem_need_bytes, 32 * 1024 * 1024), 60 * 1024 * 1024))
    return pltpu.CompilerParams(dimension_semantics=dim_sem,
                                vmem_limit_bytes=limit)


# --------------------------------------------------------------------------
# Kernel 1: tiled  (M,K)@(K,N)  + bias  (+ReLU)      (conv1 / conv2 + BN)
# --------------------------------------------------------------------------
def _mm_bias_kernel(relu, x_ref, w_ref, b_ref, o_ref, acc_ref):
    @pl.when(pl.program_id(2) == 0)
    def _():
        acc_ref[...] = jnp.zeros_like(acc_ref)

    acc_ref[...] += jnp.dot(x_ref[...], w_ref[...],
                            preferred_element_type=jnp.float32)

    @pl.when(pl.program_id(2) == pl.num_programs(2) - 1)
    def _():
        out = acc_ref[...] + b_ref[...]
        if relu:
            out = jnp.maximum(out, 0.0)
        o_ref[...] = out.astype(o_ref.dtype)


def matmul_bias(x2d, w2d, bias, *, relu=True, out_dtype=jnp.float32):
    """(M,K)@(K,N) with BN scale already folded into w2d; epilogue = bias(+ReLU)."""
    M, K = x2d.shape
    N = w2d.shape[1]
    TM, TN, TK, Mp, Np, Kp = _pick_tiles(M, N, K)

    xb = _pad2d(x2d.astype(jnp.bfloat16), Mp, Kp)
    wb = _pad2d(w2d.astype(jnp.bfloat16), Kp, Np)
    bb = _pad2d(bias.reshape(1, N).astype(jnp.float32), 1, Np)

    grid = (Mp // TM, Np // TN, Kp // TK)
    out_isize = jnp.dtype(out_dtype).itemsize
    vmem_need = (2 * (TM * TK * 2 + TK * TN * 2 + TN * 4)
                 + 2 * TM * TN * out_isize + TM * TN * 4 + (4 << 20))

    out = pl.pallas_call(
        functools.partial(_mm_bias_kernel, relu),
        out_shape=jax.ShapeDtypeStruct((Mp, Np), out_dtype),
        grid_spec=pltpu.PrefetchScalarGridSpec(
            num_scalar_prefetch=0,
            grid=grid,
            in_specs=[
                pl.BlockSpec((TM, TK), lambda i, j, k: (i, k)),
                pl.BlockSpec((TK, TN), lambda i, j, k: (k, j)),   # no M dependence
                pl.BlockSpec((1, TN), lambda i, j, k: (0, j)),    # no M dependence
            ],
            out_specs=pl.BlockSpec((TM, TN), lambda i, j, k: (i, j)),
            scratch_shapes=[pltpu.VMEM((TM, TN), jnp.float32)],
        ),
        compiler_params=_compiler_params(
            ("parallel", "parallel", "arbitrary"), vmem_need),
    )(xb, wb, bb)
    return out[:M, :N]


# --------------------------------------------------------------------------
# Kernel 2: fused epilogue with projection shortcut
#           out = relu( x@w3 + xs@ws + bias )        (conv3+bn3 + downsample)
# --------------------------------------------------------------------------
def _dual_mm_bias_relu_kernel(x_ref, w_ref, xs_ref, ws_ref, b_ref, o_ref):
    acc = jnp.dot(x_ref[...], w_ref[...], preferred_element_type=jnp.float32)
    acc = acc + jnp.dot(xs_ref[...], ws_ref[...],
                        preferred_element_type=jnp.float32)
    o_ref[...] = jnp.maximum(acc + b_ref[...], 0.0).astype(o_ref.dtype)


def dual_matmul_bias_relu(x2d, w2d, xs2d, ws2d, bias, *, out_dtype=jnp.float32):
    M, K1 = x2d.shape
    K2 = xs2d.shape[1]
    N = w2d.shape[1]
    TM = min(512, _round_up(M, 16))
    Mp = _round_up(M, TM)
    Np = _round_up(N, 128)
    TN = 256 if Np % 256 == 0 else 128
    K1p = _round_up(K1, 128)
    K2p = _round_up(K2, 128)

    xb = _pad2d(x2d.astype(jnp.bfloat16), Mp, K1p)
    wb = _pad2d(w2d.astype(jnp.bfloat16), K1p, Np)
    xsb = _pad2d(xs2d.astype(jnp.bfloat16), Mp, K2p)
    wsb = _pad2d(ws2d.astype(jnp.bfloat16), K2p, Np)
    bb = _pad2d(bias.reshape(1, N).astype(jnp.float32), 1, Np)

    grid = (Mp // TM, Np // TN)
    out_isize = jnp.dtype(out_dtype).itemsize
    vmem_need = (2 * (TM * K1p * 2 + K1p * TN * 2 + TM * K2p * 2
                      + K2p * TN * 2 + TN * 4)
                 + 2 * TM * TN * out_isize + (4 << 20))

    out = pl.pallas_call(
        _dual_mm_bias_relu_kernel,
        out_shape=jax.ShapeDtypeStruct((Mp, Np), out_dtype),
        grid_spec=pltpu.PrefetchScalarGridSpec(
            num_scalar_prefetch=0,
            grid=grid,
            in_specs=[
                pl.BlockSpec((TM, K1p), lambda i, j: (i, 0)),
                pl.BlockSpec((K1p, TN), lambda i, j: (0, j)),
                pl.BlockSpec((TM, K2p), lambda i, j: (i, 0)),
                pl.BlockSpec((K2p, TN), lambda i, j: (0, j)),
                pl.BlockSpec((1, TN), lambda i, j: (0, j)),
            ],
            out_specs=pl.BlockSpec((TM, TN), lambda i, j: (i, j)),
        ),
        compiler_params=_compiler_params(("parallel", "parallel"), vmem_need),
    )(xb, wb, xsb, wsb, bb)
    return out[:M, :N]


# --------------------------------------------------------------------------
# Kernel 3: fused epilogue with identity shortcut
#           out = relu( x@w3 + bias + residual )     (conv3+bn3 + identity)
# --------------------------------------------------------------------------
def _mm_bias_res_relu_kernel(x_ref, w_ref, b_ref, r_ref, o_ref):
    acc = jnp.dot(x_ref[...], w_ref[...], preferred_element_type=jnp.float32)
    acc = acc + b_ref[...] + r_ref[...].astype(jnp.float32)   # cast in-kernel
    o_ref[...] = jnp.maximum(acc, 0.0).astype(o_ref.dtype)


def matmul_bias_res_relu(x2d, w2d, res2d, bias, *, out_dtype=jnp.float32):
    M, K = x2d.shape
    N = w2d.shape[1]
    TM = min(512, _round_up(M, 16))
    Mp = _round_up(M, TM)
    Np = _round_up(N, 128)
    TN = 256 if Np % 256 == 0 else 128
    Kp = _round_up(K, 128)

    xb = _pad2d(x2d.astype(jnp.bfloat16), Mp, Kp)
    wb = _pad2d(w2d.astype(jnp.bfloat16), Kp, Np)
    rb = _pad2d(res2d.astype(jnp.bfloat16), Mp, Np)
    bb = _pad2d(bias.reshape(1, N).astype(jnp.float32), 1, Np)

    grid = (Mp // TM, Np // TN)
    out_isize = jnp.dtype(out_dtype).itemsize
    vmem_need = (2 * (TM * Kp * 2 + Kp * TN * 2 + TM * TN * 2 + TN * 4)
                 + 2 * TM * TN * out_isize + (4 << 20))

    out = pl.pallas_call(
        _mm_bias_res_relu_kernel,
        out_shape=jax.ShapeDtypeStruct((Mp, Np), out_dtype),
        grid_spec=pltpu.PrefetchScalarGridSpec(
            num_scalar_prefetch=0,
            grid=grid,
            in_specs=[
                pl.BlockSpec((TM, Kp), lambda i, j: (i, 0)),
                pl.BlockSpec((Kp, TN), lambda i, j: (0, j)),
                pl.BlockSpec((1, TN), lambda i, j: (0, j)),
                pl.BlockSpec((TM, TN), lambda i, j: (i, j)),
            ],
            out_specs=pl.BlockSpec((TM, TN), lambda i, j: (i, j)),
        ),
        compiler_params=_compiler_params(("parallel", "parallel"), vmem_need),
    )(xb, wb, bb, rb)
    return out[:M, :N]


# --------------------------------------------------------------------------
# Glue: im2col for the 3x3 conv, BN folding, NCHW <-> NHWC plumbing
# --------------------------------------------------------------------------
def _im2col_3x3(x_nhwc, stride):
    # TODO(synk): fuse the 3x3 tap construction into the conv2 kernel (load a
    # padded spatial tile once into VMEM and build the 9 taps there) to remove
    # the patches HBM round trip entirely; patches are built in bf16 here to
    # halve that traffic in the meantime.
    n, h, w, c = x_nhwc.shape
    xp = jnp.pad(x_nhwc, ((0, 0), (1, 1), (1, 1), (0, 0)))
    ho = (h + 2 - 3) // stride + 1
    wo = (w + 2 - 3) // stride + 1
    cols = []
    for kh in range(3):
        for kw in range(3):
            patch = lax.slice(
                xp,
                (0, kh, kw, 0),
                (n, kh + (ho - 1) * stride + 1, kw + (wo - 1) * stride + 1, c),
                (1, stride, stride, 1),
            )
            cols.append(patch)
    patches = jnp.concatenate(cols, axis=-1)   # taps (kh,kw) major, channel minor
    return patches.reshape(n * ho * wo, 9 * c), ho, wo


def _fold_bn(gamma, beta, mean, var, eps=1e-5):
    scale = gamma / jnp.sqrt(var + eps)
    return scale, beta - mean * scale


def bottleneck_forward(x_nchw, params, stride):
    x = jnp.transpose(x_nchw, (0, 2, 3, 1))  # -> NHWC
    n, h, w, cin = x.shape
    planes = params["w1"].shape[0]
    cexp = 4 * planes

    # fold BN: scale goes into the weight matrix, bias stays for the epilogue
    s1, b1 = _fold_bn(params["g1"], params["be1"], params["m1"], params["v1"])
    s2, b2 = _fold_bn(params["g2"], params["be2"], params["m2"], params["v2"])
    s3, b3 = _fold_bn(params["g3"], params["be3"], params["m3"], params["v3"])

    w1 = params["w1"].reshape(planes, cin).T * s1[None, :]                 # (Cin, planes)
    w2 = (jnp.transpose(params["w2"], (2, 3, 1, 0)).reshape(9 * planes, planes)
          * s2[None, :])                                                   # (9*planes, planes)
    w3 = params["w3"].reshape(cexp, planes).T * s3[None, :]                # (planes, Cexp)

    # conv1 (1x1) + bn1 + relu     (bf16 intermediate)
    out1 = matmul_bias(x.reshape(n * h * w, cin), w1, b1,
                       relu=True, out_dtype=jnp.bfloat16)
    out1 = out1.reshape(n, h, w, planes)

    # conv2 (3x3, stride, pad=1) + bn2 + relu
    patches, ho, wo = _im2col_3x3(out1, stride)
    out2 = matmul_bias(patches, w2, b2, relu=True, out_dtype=jnp.bfloat16)

    # conv3 (1x1) + bn3 + shortcut + add + relu, fused in one pallas_call
    if stride != 1 or cin != cexp:
        ss, bs = _fold_bn(params["gs"], params["bes"], params["ms"], params["vs"])
        ws = params["ws"].reshape(cexp, cin).T * ss[None, :]               # (Cin, Cexp)
        xs = x[:, ::stride, ::stride, :].reshape(n * ho * wo, cin)
        out3 = dual_matmul_bias_relu(out2, w3, xs, ws, b3 + bs,
                                     out_dtype=jnp.float32)
    else:
        res = x.reshape(n * ho * wo, cexp)
        out3 = matmul_bias_res_relu(out2, w3, res, b3, out_dtype=jnp.float32)

    out3 = out3.reshape(n, ho, wo, cexp)
    return jnp.transpose(out3, (0, 3, 1, 2))  # -> NCHW


# --------------------------------------------------------------------------
# Pure-JAX reference (NCHW, like PyTorch) for correctness checking
# --------------------------------------------------------------------------
def reference_forward(x, p, stride, eps=1e-5):
    def conv(xx, ww, s=1, pad=0):
        return lax.conv_general_dilated(
            xx, ww, (s, s), [(pad, pad), (pad, pad)],
            dimension_numbers=("NCHW", "OIHW", "NCHW"))

    def bn(xx, g, b, m, v):
        g, b, m, v = (t[None, :, None, None] for t in (g, b, m, v))
        return (xx - m) / jnp.sqrt(v + eps) * g + b

    cexp = p["w3"].shape[0]
    out = jax.nn.relu(bn(conv(x, p["w1"]), p["g1"], p["be1"], p["m1"], p["v1"]))
    out = jax.nn.relu(bn(conv(out, p["w2"], s=stride, pad=1),
                         p["g2"], p["be2"], p["m2"], p["v2"]))
    out = bn(conv(out, p["w3"]), p["g3"], p["be3"], p["m3"], p["v3"])
    if stride != 1 or x.shape[1] != cexp:
        short = bn(conv(x, p["ws"], s=stride), p["gs"], p["bes"], p["ms"], p["vs"])
    else:
        short = x
    return jax.nn.relu(out + short)


# --------------------------------------------------------------------------
# Deterministic parameter construction
# --------------------------------------------------------------------------
def make_params(key, in_planes, planes):
    cexp = 4 * planes
    ks = jax.random.split(key, 16)

    def w(k, shape):
        return 0.1 * jax.random.normal(k, shape, jnp.float32)

    def bn_params(k, c):
        k1, k2, k3, k4 = jax.random.split(k, 4)
        gamma = 1.0 + 0.1 * jax.random.normal(k1, (c,), jnp.float32)
        beta = 0.1 * jax.random.normal(k2, (c,), jnp.float32)
        mean = 0.1 * jax.random.normal(k3, (c,), jnp.float32)
        var = 0.5 + jax.random.uniform(k4, (c,), jnp.float32)
        return gamma, beta, mean, var

    p = {}
    p["w1"] = w(ks[0], (planes, in_planes, 1, 1))
    p["w2"] = w(ks[1], (planes, planes, 3, 3))
    p["w3"] = w(ks[2], (cexp, planes, 1, 1))
    p["ws"] = w(ks[3], (cexp, in_planes, 1, 1))
    p["g1"], p["be1"], p["m1"], p["v1"] = bn_params(ks[4], planes)
    p["g2"], p["be2"], p["m2"], p["v2"] = bn_params(ks[5], planes)
    p["g3"], p["be3"], p["m3"], p["v3"] = bn_params(ks[6], cexp)
    p["gs"], p["bes"], p["ms"], p["vs"] = bn_params(ks[7], cexp)
    return p


if __name__ == "__main__":
    key = jax.random.PRNGKey(0)
    fwd = jax.jit(bottleneck_forward, static_argnums=(2,))

    configs = [
        # (in_planes, planes, stride, N, H, W): downsample- and identity-shortcut paths
        (16, 8, 2, 2, 16, 16),
        (32, 8, 1, 2, 16, 16),
    ]
    for cin, planes, stride, n, h, w in configs:
        key, kx, kp = jax.random.split(key, 3)
        x = jax.random.normal(kx, (n, cin, h, w), jnp.float32)  # NCHW like PyTorch
        params = make_params(kp, cin, planes)

        out = jax.block_until_ready(fwd(x, params, stride))
        ref = jax.block_until_ready(reference_forward(x, params, stride))

        assert out.shape == (n, 4 * planes, h // stride, w // stride), out.shape
        # bf16 MXU inputs -> relaxed tolerance vs the f32 reference
        assert jnp.allclose(out, ref, atol=5e-2, rtol=5e-2), float(
            jnp.max(jnp.abs(out - ref)))

    print("KERNEL_OK")
</pallas_src>

<mosaic_0001>
module attributes {stable_mosaic.version = 11 : i64} {
  func.func @_mm_bias_kernel(%arg0: i32, %arg1: i32, %arg2: i32, %arg3: memref<512x128xbf16, #tpu.memory_space<vmem>>, %arg4: memref<128x128xbf16, #tpu.memory_space<vmem>>, %arg5: memref<1x128xf32, #tpu.memory_space<vmem>>, %arg6: memref<512x128xbf16, #tpu.memory_space<vmem>>, %arg7: memref<512x128xf32, #tpu.memory_space<vmem>>) attributes {dimension_semantics = [#tpu.dimension_semantics<parallel>, #tpu.dimension_semantics<parallel>, #tpu.dimension_semantics<arbitrary>], iteration_bounds = array<i64: 1, 1, 1>, scalar_prefetch = 0 : i64, scratch_operands = 1 : i64, tpu.core_type = #tpu.core_type<tc>, window_params = [{transform_indices = @transform_0, window_bounds = array<i64: 512, 128>}, {transform_indices = @transform_1, window_bounds = array<i64: 128, 128>}, {transform_indices = @transform_2, window_bounds = array<i64: 1, 128>}, {transform_indices = @transform_3, window_bounds = array<i64: 512, 128>}]} {
    %c0_i32 = arith.constant 0 : i32
    %0 = arith.cmpi eq, %arg2, %c0_i32 : i32
    %1 = arith.extui %0 : i1 to i32
    %c0_i32_0 = arith.constant 0 : i32
    %2 = arith.cmpi ne, %1, %c0_i32_0 : i32
    scf.if %2 {
      %cst_10 = arith.constant 0.000000e+00 : f32
      %12 = vector.broadcast %cst_10 : f32 to vector<512x128xf32>
      %c0_11 = arith.constant 0 : index
      %c0_12 = arith.constant 0 : index
      %13 = vector.load %arg7[%c0_11, %c0_12] : memref<512x128xf32, #tpu.memory_space<vmem>>, vector<512x128xf32>
      tpu.vector_store %arg7[%c0_11, %c0_12], %12 {strides = array<i32>} : memref<512x128xf32, #tpu.memory_space<vmem>>, vector<512x128xf32>,
    } else {
    }
    %c0 = arith.constant 0 : index
    %c0_1 = arith.constant 0 : index
    %3 = vector.load %arg7[%c0, %c0_1] : memref<512x128xf32, #tpu.memory_space<vmem>>, vector<512x128xf32>
    %c0_2 = arith.constant 0 : index
    %c0_3 = arith.constant 0 : index
    %4 = vector.load %arg3[%c0_2, %c0_3] : memref<512x128xbf16, #tpu.memory_space<vmem>>, vector<512x128xbf16>
    %c0_4 = arith.constant 0 : index
    %c0_5 = arith.constant 0 : index
    %5 = vector.load %arg4[%c0_4, %c0_5] : memref<128x128xbf16, #tpu.memory_space<vmem>>, vector<128x128xbf16>
    %cst = arith.constant dense<0.000000e+00> : vector<512x128xf32>
    %6 = tpu.matmul %4, %5, %cst {dimension_numbers = #tpu.dot_dimension_numbers<[1], [0], [0], [1], [0, 0, 1, 1], [], []>} : vector<512x128xbf16>, vector<128x128xbf16>, vector<512x128xf32> -> vector<512x128xf32>
    %7 = arith.addf %3, %6 : vector<512x128xf32>
    %c0_6 = arith.constant 0 : index
    %c0_7 = arith.constant 0 : index
    %8 = vector.load %arg7[%c0_6, %c0_7] : memref<512x128xf32, #tpu.memory_space<vmem>>, vector<512x128xf32>
    tpu.vector_store %arg7[%c0_6, %c0_7], %7 {strides = array<i32>} : memref<512x128xf32, #tpu.memory_space<vmem>>, vector<512x128xf32>,
    %c0_i32_8 = arith.constant 0 : i32
    %9 = arith.cmpi eq, %arg2, %c0_i32_8 : i32
    %10 = arith.extui %9 : i1 to i32
    %c0_i32_9 = arith.constant 0 : i32
    %11 = arith.cmpi ne, %10, %c0_i32_9 : i32
    scf.if %11 {
      %c0_10 = arith.constant 0 : index
      %c0_11 = arith.constant 0 : index
      %12 = vector.load %arg7[%c0_10, %c0_11] : memref<512x128xf32, #tpu.memory_space<vmem>>, vector<512x128xf32>
      %c0_12 = arith.constant 0 : index
      %c0_13 = arith.constant 0 : index
      %13 = vector.load %arg5[%c0_12, %c0_13] : memref<1x128xf32, #tpu.memory_space<vmem>>, vector<1x128xf32>
      %14 = vector.broadcast %13 : vector<1x128xf32> to vector<512x128xf32>
      %15 = arith.addf %12, %14 : vector<512x128xf32>
      %cst_14 = arith.constant 0.000000e+00 : f32
      %16 = vector.broadcast %cst_14 : f32 to vector<512x128xf32>
      %17 = arith.maximumf %15, %16 : vector<512x128xf32>
      %18 = arith.truncf %17 : vector<512x128xf32> to vector<512x128xbf16>
      %c0_15 = arith.constant 0 : index
      %c0_16 = arith.constant 0 : index
      %19 = vector.load %arg6[%c0_15, %c0_16] : memref<512x128xbf16, #tpu.memory_space<vmem>>, vector<512x128xbf16>
      tpu.vector_store %arg6[%c0_15, %c0_16], %18 {strides = array<i32>} : memref<512x128xbf16, #tpu.memory_space<vmem>>, vector<512x128xbf16>,
    } else {
    }
    return
  }
  func.func @transform_0(%arg0: i32, %arg1: i32, %arg2: i32) -> (i32, i32) {
    %c0_i32 = arith.constant 0 : i32
    return %arg0, %arg2 : i32, i32
  }
  func.func @transform_1(%arg0: i32, %arg1: i32, %arg2: i32) -> (i32, i32) {
    %c0_i32 = arith.constant 0 : i32
    return %arg2, %arg1 : i32, i32
  }
  func.func @transform_2(%arg0: i32, %arg1: i32, %arg2: i32) -> (i32, i32) {
    %c0_i32 = arith.constant 0 : i32
    %c0_i32_0 = arith.constant 0 : i32
    return %c0_i32, %arg1 : i32, i32
  }
  func.func @transform_3(%arg0: i32, %arg1: i32, %arg2: i32) -> (i32, i32) {
    %c0_i32 = arith.constant 0 : i32
    return %arg0, %arg1 : i32, i32
  }
}

module attributes {stable_mosaic.version = 11 : i64} {
  func.func @_mm_bias_kernel(%arg0: i32, %arg1: i32, %arg2: i32, %arg3: memref<128x128xbf16, #tpu.memory_space<vmem>>, %arg4: memref<128x128xbf16, #tpu.memory_space<vmem>>, %arg5: memref<1x128xf32, #tpu.memory_space<vmem>>, %arg6: memref<128x128xbf16, #tpu.memory_space<vmem>>, %arg7: memref<128x128xf32, #tpu.memory_space<vmem>>) attributes {dimension_semantics = [#tpu.dimension_semantics<parallel>, #tpu.dimension_semantics<parallel>, #tpu.dimension_semantics<arbitrary>], iteration_bounds = array<i64: 1, 1, 1>, scalar_prefetch = 0 : i64, scratch_operands = 1 : i64, tpu.core_type = #tpu.core_type<tc>, window_params = [{transform_indices = @transform_0, window_bounds = array<i64: 128, 128>}, {transform_indices = @transform_1, window_bounds = array<i64: 128, 128>}, {transform_indices = @transform_2, window_bounds = array<i64: 1, 128>}, {transform_indices = @transform_3, window_bounds = array<i64: 128, 128>}]} {
    %c0_i32 = arith.constant 0 : i32
    %0 = arith.cmpi eq, %arg2, %c0_i32 : i32
    %1 = arith.extui %0 : i1 to i32
    %c0_i32_0 = arith.constant 0 : i32
    %2 = arith.cmpi ne, %1, %c0_i32_0 : i32
    scf.if %2 {
      %cst_10 = arith.constant 0.000000e+00 : f32
      %12 = vector.broadcast %cst_10 : f32 to vector<128x128xf32>
      %c0_11 = arith.constant 0 : index
      %c0_12 = arith.constant 0 : index
      %13 = vector.load %arg7[%c0_11, %c0_12] : memref<128x128xf32, #tpu.memory_space<vmem>>, vector<128x128xf32>
      tpu.vector_store %arg7[%c0_11, %c0_12], %12 {strides = array<i32>} : memref<128x128xf32, #tpu.memory_space<vmem>>, vector<128x128xf32>,
    } else {
    }
    %c0 = arith.constant 0 : index
    %c0_1 = arith.constant 0 : index
    %3 = vector.load %arg7[%c0, %c0_1] : memref<128x128xf32, #tpu.memory_space<vmem>>, vector<128x128xf32>
    %c0_2 = arith.constant 0 : index
    %c0_3 = arith.constant 0 : index
    %4 = vector.load %arg3[%c0_2, %c0_3] : memref<128x128xbf16, #tpu.memory_space<vmem>>, vector<128x128xbf16>
    %c0_4 = arith.constant 0 : index
    %c0_5 = arith.constant 0 : index
    %5 = vector.load %arg4[%c0_4, %c0_5] : memref<128x128xbf16, #tpu.memory_space<vmem>>, vector<128x128xbf16>
    %cst = arith.constant dense<0.000000e+00> : vector<128x128xf32>
    %6 = tpu.matmul %4, %5, %cst {dimension_numbers = #tpu.dot_dimension_numbers<[1], [0], [0], [1], [0, 0, 1, 1], [], []>} : vector<128x128xbf16>, vector<128x128xbf16>, vector<128x128xf32> -> vector<128x128xf32>
    %7 = arith.addf %3, %6 : vector<128x128xf32>
    %c0_6 = arith.constant 0 : index
    %c0_7 = arith.constant 0 : index
    %8 = vector.load %arg7[%c0_6, %c0_7] : memref<128x128xf32, #tpu.memory_space<vmem>>, vector<128x128xf32>
    tpu.vector_store %arg7[%c0_6, %c0_7], %7 {strides = array<i32>} : memref<128x128xf32, #tpu.memory_space<vmem>>, vector<128x128xf32>,
    %c0_i32_8 = arith.constant 0 : i32
    %9 = arith.cmpi eq, %arg2, %c0_i32_8 : i32
    %10 = arith.extui %9 : i1 to i32
    %c0_i32_9 = arith.constant 0 : i32
    %11 = arith.cmpi ne, %10, %c0_i32_9 : i32
    scf.if %11 {
      %c0_10 = arith.constant 0 : index
      %c0_11 = arith.constant 0 : index
      %12 = vector.load %arg7[%c0_10, %c0_11] : memref<128x128xf32, #tpu.memory_space<vmem>>, vector<128x128xf32>
      %c0_12 = arith.constant 0 : index
      %c0_13 = arith.constant 0 : index
      %13 = vector.load %arg5[%c0_12, %c0_13] : memref<1x128xf32, #tpu.memory_space<vmem>>, vector<1x128xf32>
      %14 = vector.broadcast %13 : vector<1x128xf32> to vector<128x128xf32>
      %15 = arith.addf %12, %14 : vector<128x128xf32>
      %cst_14 = arith.constant 0.000000e+00 : f32
      %16 = vector.broadcast %cst_14 : f32 to vector<128x128xf32>
      %17 = arith.maximumf %15, %16 : vector<128x128xf32>
      %18 = arith.truncf %17 : vector<128x128xf32> to vector<128x128xbf16>
      %c0_15 = arith.constant 0 : index
      %c0_16 = arith.constant 0 : index
      %19 = vector.load %arg6[%c0_15, %c0_16] : memref<128x128xbf16, #tpu.memory_space<vmem>>, vector<128x128xbf16>
      tpu.vector_store %arg6[%c0_15, %c0_16], %18 {strides = array<i32>} : memref<128x128xbf16, #tpu.memory_space<vmem>>, vector<128x128xbf16>,
    } else {
    }
    return
  }
  func.func @transform_0(%arg0: i32, %arg1: i32, %arg2: i32) -> (i32, i32) {
    %c0_i32 = arith.constant 0 : i32
    return %arg0, %arg2 : i32, i32
  }
  func.func @transform_1(%arg0: i32, %arg1: i32, %arg2: i32) -> (i32, i32) {
    %c0_i32 = arith.constant 0 : i32
    return %arg2, %arg1 : i32, i32
  }
  func.func @transform_2(%arg0: i32, %arg1: i32, %arg2: i32) -> (i32, i32) {
    %c0_i32 = arith.constant 0 : i32
    %c0_i32_0 = arith.constant 0 : i32
    return %c0_i32, %arg1 : i32, i32
  }
  func.func @transform_3(%arg0: i32, %arg1: i32, %arg2: i32) -> (i32, i32) {
    %c0_i32 = arith.constant 0 : i32
    return %arg0, %arg1 : i32, i32
  }
}

module attributes {stable_mosaic.version = 11 : i64} {
  func.func @_dual_mm_bias_relu_kernel(%arg0: i32, %arg1: i32, %arg2: memref<128x128xbf16, #tpu.memory_space<vmem>>, %arg3: memref<128x128xbf16, #tpu.memory_space<vmem>>, %arg4: memref<128x128xbf16, #tpu.memory_space<vmem>>, %arg5: memref<128x128xbf16, #tpu.memory_space<vmem>>, %arg6: memref<1x128xf32, #tpu.memory_space<vmem>>, %arg7: memref<128x128xf32, #tpu.memory_space<vmem>>) attributes {dimension_semantics = [#tpu.dimension_semantics<parallel>, #tpu.dimension_semantics<parallel>], iteration_bounds = array<i64: 1, 1>, scalar_prefetch = 0 : i64, scratch_operands = 0 : i64, tpu.core_type = #tpu.core_type<tc>, window_params = [{transform_indices = @transform_0, window_bounds = array<i64: 128, 128>}, {transform_indices = @transform_1, window_bounds = array<i64: 128, 128>}, {transform_indices = @transform_2, window_bounds = array<i64: 128, 128>}, {transform_indices = @transform_3, window_bounds = array<i64: 128, 128>}, {transform_indices = @transform_4, window_bounds = array<i64: 1, 128>}, {transform_indices = @transform_5, window_bounds = array<i64: 128, 128>}]} {
    %c0 = arith.constant 0 : index
    %c0_0 = arith.constant 0 : index
    %0 = vector.load %arg2[%c0, %c0_0] : memref<128x128xbf16, #tpu.memory_space<vmem>>, vector<128x128xbf16>
    %c0_1 = arith.constant 0 : index
    %c0_2 = arith.constant 0 : index
    %1 = vector.load %arg3[%c0_1, %c0_2] : memref<128x128xbf16, #tpu.memory_space<vmem>>, vector<128x128xbf16>
    %cst = arith.constant dense<0.000000e+00> : vector<128x128xf32>
    %2 = tpu.matmul %0, %1, %cst {dimension_numbers = #tpu.dot_dimension_numbers<[1], [0], [0], [1], [0, 0, 1, 1], [], []>} : vector<128x128xbf16>, vector<128x128xbf16>, vector<128x128xf32> -> vector<128x128xf32>
    %c0_3 = arith.constant 0 : index
    %c0_4 = arith.constant 0 : index
    %3 = vector.load %arg4[%c0_3, %c0_4] : memref<128x128xbf16, #tpu.memory_space<vmem>>, vector<128x128xbf16>
    %c0_5 = arith.constant 0 : index
    %c0_6 = arith.constant 0 : index
    %4 = vector.load %arg5[%c0_5, %c0_6] : memref<128x128xbf16, #tpu.memory_space<vmem>>, vector<128x128xbf16>
    %cst_7 = arith.constant dense<0.000000e+00> : vector<128x128xf32>
    %5 = tpu.matmul %3, %4, %cst_7 {dimension_numbers = #tpu.dot_dimension_numbers<[1], [0], [0], [1], [0, 0, 1, 1], [], []>} : vector<128x128xbf16>, vector<128x128xbf16>, vector<128x128xf32> -> vector<128x128xf32>
    %6 = arith.addf %2, %5 : vector<128x128xf32>
    %c0_8 = arith.constant 0 : index
    %c0_9 = arith.constant 0 : index
    %7 = vector.load %arg6[%c0_8, %c0_9] : memref<1x128xf32, #tpu.memory_space<vmem>>, vector<1x128xf32>
    %8 = vector.broadcast %7 : vector<1x128xf32> to vector<128x128xf32>
    %9 = arith.addf %6, %8 : vector<128x128xf32>
    %cst_10 = arith.constant 0.000000e+00 : f32
    %10 = vector.broadcast %cst_10 : f32 to vector<128x128xf32>
    %11 = arith.maximumf %9, %10 : vector<128x128xf32>
    %c0_11 = arith.constant 0 : index
    %c0_12 = arith.constant 0 : index
    %12 = vector.load %arg7[%c0_11, %c0_12] : memref<128x128xf32, #tpu.memory_space<vmem>>, vector<128x128xf32>
    tpu.vector_store %arg7[%c0_11, %c0_12], %11 {strides = array<i32>} : memref<128x128xf32, #tpu.memory_space<vmem>>, vector<128x128xf32>,
    return
  }
  func.func @transform_0(%arg0: i32, %arg1: i32) -> (i32, i32) {
    %c0_i32 = arith.constant 0 : i32
    %c0_i32_0 = arith.constant 0 : i32
    return %arg0, %c0_i32 : i32, i32
  }
  func.func @transform_1(%arg0: i32, %arg1: i32) -> (i32, i32) {
    %c0_i32 = arith.constant 0 : i32
    %c0_i32_0 = arith.constant 0 : i32
    return %c0_i32, %arg1 : i32, i32
  }
  func.func @transform_2(%arg0: i32, %arg1: i32) -> (i32, i32) {
    %c0_i32 = arith.constant 0 : i32
    %c0_i32_0 = arith.constant 0 : i32
    return %arg0, %c0_i32 : i32, i32
  }
  func.func @transform_3(%arg0: i32, %arg1: i32) -> (i32, i32) {
    %c0_i32 = arith.constant 0 : i32
    %c0_i32_0 = arith.constant 0 : i32
    return %c0_i32, %arg1 : i32, i32
  }
  func.func @transform_4(%arg0: i32, %arg1: i32) -> (i32, i32) {
    %c0_i32 = arith.constant 0 : i32
    %c0_i32_0 = arith.constant 0 : i32
    return %c0_i32, %arg1 : i32, i32
  }
  func.func @transform_5(%arg0: i32, %arg1: i32) -> (i32, i32) {
    %c0_i32 = arith.constant 0 : i32
    return %arg0, %arg1 : i32, i32
  }
}

</mosaic_0001>

<bundles_post_ra>
// kernel: bottleneck_forward.3
= control target key start
LH: loop header
LB: loop body
LE: loop exit
PB: predicated region body
PF: predicated region fallthrough
CT: control target
= control target key end

     0   :  { %s1815_s1 = inlined_call_operand.vmem [shape: bf16[128,128], index: 1, kind: input, shape index: {}]   ;;  %s1816_s2 = inlined_call_operand.vmem [shape: f32[1,128], index: 2, kind: input, shape index: {}]   ;;  %s1817_s0 = inlined_call_operand.vmem [shape: bf16[512,128], index: 0, kind: input, shape index: {}]   ;;  %s1818_s3 = inlined_call_operand.vmem [shape: bf16[512,128], index: 3, kind: output, shape index: {}]  }
   0x1   :  { %v1293_v0 = vld [vmem:[%s1815_s1 + $0x38] sm:$0xff]  ;;  %v1292_v1 = vld [vmem:[%s1815_s1 + $0x30] sm:$0xff]  ;;  %v1291_v2 = vld [vmem:[%s1815_s1 + $0x28] sm:$0xff] }
   0x2   :  { %466 = vmatpush.bf16.msra.mxu0 %v1293_v0  ;;  %1485 = vmatpush.bf16.msra.mxu1 %v1293_v0  ;;  %v1290_v3 = vld [vmem:[%s1815_s1 + $0x20] sm:$0xff]  ;;  %v1289_v4 = vld [vmem:[%s1815_s1 + $0x18] sm:$0xff]  ;;  %v1288_v5 = vld [vmem:[%s1815_s1 + $0x10] sm:$0xff] }
   0x3   :  { %1486 = vmatpush.bf16.msra.mxu2 %v1293_v0  ;;  %1487 = vmatpush.bf16.msra.mxu3 %v1293_v0  ;;  %v1287_v6 = vld [vmem:[%s1815_s1 + $0x8] sm:$0xff]  ;;  %v1286_v7 = vld [vmem:[%s1815_s1] sm:$0xff]  ;;  %v1256_v16 = vld [vmem:[%s1817_s0 + $0x10] sm:$0xff] }
   0x4   :  { %v1254_v8 = vld [vmem:[%s1817_s0] sm:$0xff]  ;;  %v1255_v12 = vld [vmem:[%s1817_s0 + $0x8] sm:$0xff]  ;;  %v1264_v17 = vld [vmem:[%s1817_s0 + $0x50] sm:$0xff] }
   0x5   :  { %v1262_v9 = vld [vmem:[%s1817_s0 + $0x40] sm:$0xff]  ;;  %v1263_v13 = vld [vmem:[%s1817_s0 + $0x48] sm:$0xff]  ;;  %v1272_v18 = vld [vmem:[%s1817_s0 + $0x90] sm:$0xff] }
   0x6   :  { %467 = vmatpush.bf16.msra.mxu0 %v1292_v1  ;;  %1488 = vmatpush.bf16.msra.mxu1 %v1292_v1  ;;  %v1270_v10 = vld [vmem:[%s1817_s0 + $0x80] sm:$0xff]  ;;  %v1271_v14 = vld [vmem:[%s1817_s0 + $0x88] sm:$0xff]  ;;  %v1280_v19 = vld [vmem:[%s1817_s0 + $0xd0] sm:$0xff] }
   0x7   :  { %1489 = vmatpush.bf16.msra.mxu2 %v1292_v1  ;;  %1490 = vmatpush.bf16.msra.mxu3 %v1292_v1  ;;  %v1278_v11 = vld [vmem:[%s1817_s0 + $0xc0] sm:$0xff]  ;;  %v1279_v15 = vld [vmem:[%s1817_s0 + $0xc8] sm:$0xff]  ;;  %v1257_v20 = vld [vmem:[%s1817_s0 + $0x18] sm:$0xff] }
   0x8   :  { %v1265_v21 = vld [vmem:[%s1817_s0 + $0x58] sm:$0xff]  ;;  %v1258_v24 = vld [vmem:[%s1817_s0 + $0x20] sm:$0xff]  ;;  %v1259_v28 = vld [vmem:[%s1817_s0 + $0x28] sm:$0xff] }
   0x9   :  { %v1273_v22 = vld [vmem:[%s1817_s0 + $0x98] sm:$0xff]  ;;  %v1266_v25 = vld [vmem:[%s1817_s0 + $0x60] sm:$0xff]  ;;  %v1267_v29 = vld [vmem:[%s1817_s0 + $0x68] sm:$0xff] }
   0xa   :  { %468 = vmatpush.bf16.msra.mxu0 %v1291_v2  ;;  %1491 = vmatpush.bf16.msra.mxu1 %v1291_v2  ;;  %v1281_v23 = vld [vmem:[%s1817_s0 + $0xd8] sm:$0xff]  ;;  %v1274_v26 = vld [vmem:[%s1817_s0 + $0xa0] sm:$0xff]  ;;  %v1275_v30 = vld [vmem:[%s1817_s0 + $0xa8] sm:$0xff] }
   0xb   :  { %1492 = vmatpush.bf16.msra.mxu2 %v1291_v2  ;;  %1493 = vmatpush.bf16.msra.mxu3 %v1291_v2  ;;  %v1282_v27 = vld [vmem:[%s1817_s0 + $0xe0] sm:$0xff]  ;;  %v1283_v31 = vld [vmem:[%s1817_s0 + $0xe8] sm:$0xff]  ;;  %v1260_v32 = vld [vmem:[%s1817_s0 + $0x30] sm:$0xff] }
   0xc   :  { %v1268_v33 = vld [vmem:[%s1817_s0 + $0x70] sm:$0xff]  ;;  %v1261_v36 = vld [vmem:[%s1817_s0 + $0x38] sm:$0xff]  ;;  %v1653_v42 = vld [vmem:[%s1816_s2] ss:$0 sm:$0xff] }
   0xd   :  { %v1276_v34 = vld [vmem:[%s1817_s0 + $0xb0] sm:$0xff]  ;;  %v1269_v37 = vld [vmem:[%s1817_s0 + $0x78] sm:$0xff] }
   0xe   :  { %469 = vmatpush.bf16.msra.mxu0 %v1290_v3  ;;  %1494 = vmatpush.bf16.msra.mxu1 %v1290_v3  ;;  %v1284_v35 = vld [vmem:[%s1817_s0 + $0xf0] sm:$0xff]  ;;  %v1277_v38 = vld [vmem:[%s1817_s0 + $0xb8] sm:$0xff] }
   0xf   :  { %1495 = vmatpush.bf16.msra.mxu2 %v1290_v3  ;;  %1496 = vmatpush.bf16.msra.mxu3 %v1290_v3  ;;  %v1285_v39 = vld [vmem:[%s1817_s0 + $0xf8] sm:$0xff] }
  0x12   :  { %470 = vmatpush.bf16.msra.mxu0 %v1289_v4  ;;  %1497 = vmatpush.bf16.msra.mxu1 %v1289_v4 }
  0x13   :  { %1498 = vmatpush.bf16.msra.mxu2 %v1289_v4  ;;  %1499 = vmatpush.bf16.msra.mxu3 %v1289_v4 }
  0x16   :  { %471 = vmatpush.bf16.msra.mxu0 %v1288_v5  ;;  %1500 = vmatpush.bf16.msra.mxu1 %v1288_v5 }
  0x17   :  { %1501 = vmatpush.bf16.msra.mxu2 %v1288_v5  ;;  %1502 = vmatpush.bf16.msra.mxu3 %v1288_v5 }
  0x1a   :  { %472 = vmatpush.bf16.msra.mxu0 %v1287_v6  ;;  %1503 = vmatpush.bf16.msra.mxu1 %v1287_v6 }
  0x1b   :  { %1504 = vmatpush.bf16.msra.mxu2 %v1287_v6  ;;  %1505 = vmatpush.bf16.msra.mxu3 %v1287_v6 }
  0x1e   :  { %473 = vmatpush.bf16.msra.mxu0 %v1286_v7  ;;  %1506 = vmatpush.bf16.msra.mxu1 %v1286_v7 }
  0x1f   :  { %1507 = vmatpush.bf16.msra.mxu2 %v1286_v7  ;;  %1508 = vmatpush.bf16.msra.mxu3 %v1286_v7 }
  0x21   :  { %474 = vmatmul.bf16.vlgmr.msra.gmra.mxu0 %v1254_v8  ;;  %514 = vmatmul.bf16.vlgmr.msra.gmra.mxu1 %v1262_v9 }
  0x22   :  { %554 = vmatmul.bf16.vlgmr.msra.gmra.mxu2 %v1270_v10  ;;  %594 = vmatmul.bf16.vlgmr.msra.gmra.mxu3 %v1278_v11 }
  0x31   :  { %479 = vmatmul.bf16.gmra.mxu0 %v1255_v12  ;;  %519 = vmatmul.bf16.gmra.mxu1 %v1263_v13 }
  0x32   :  { %559 = vmatmul.bf16.gmra.mxu2 %v1271_v14  ;;  %599 = vmatmul.bf16.gmra.mxu3 %v1279_v15 }
  0x41   :  { %484 = vmatmul.bf16.gmra.mxu0 %v1256_v16  ;;  %524 = vmatmul.bf16.gmra.mxu1 %v1264_v17 }
  0x42   :  { %564 = vmatmul.bf16.gmra.mxu2 %v1272_v18  ;;  %604 = vmatmul.bf16.gmra.mxu3 %v1280_v19 }
  0x51   :  { %489 = vmatmul.bf16.gmra.mxu0 %v1257_v20  ;;  %529 = vmatmul.bf16.gmra.mxu1 %v1265_v21 }
  0x52   :  { %569 = vmatmul.bf16.gmra.mxu2 %v1273_v22  ;;  %609 = vmatmul.bf16.gmra.mxu3 %v1281_v23 }
  0x61   :  { %494 = vmatmul.bf16.gmra.mxu0 %v1258_v24  ;;  %534 = vmatmul.bf16.gmra.mxu1 %v1266_v25 }
  0x62   :  { %574 = vmatmul.bf16.gmra.mxu2 %v1274_v26  ;;  %614 = vmatmul.bf16.gmra.mxu3 %v1282_v27 }
  0x71   :  { %499 = vmatmul.bf16.gmra.mxu0 %v1259_v28  ;;  %539 = vmatmul.bf16.gmra.mxu1 %v1267_v29 }
  0x72   :  { %579 = vmatmul.bf16.gmra.mxu2 %v1275_v30  ;;  %619 = vmatmul.bf16.gmra.mxu3 %v1283_v31 }
  0x81   :  { %504 = vmatmul.bf16.gmra.mxu0 %v1260_v32  ;;  %544 = vmatmul.bf16.gmra.mxu1 %v1268_v33 }
  0x82   :  { %584 = vmatmul.bf16.gmra.mxu2 %v1276_v34  ;;  %624 = vmatmul.bf16.gmra.mxu3 %v1284_v35 }
  0x91   :  { %509 = vmatmul.bf16.gmra.mxu0 %v1261_v36  ;;  %549 = vmatmul.bf16.gmra.mxu1 %v1269_v37 }
  0x92   :  { %589 = vmatmul.bf16.gmra.mxu2 %v1277_v38  ;;  %629 = vmatmul.bf16.gmra.mxu3 %v1285_v39 }
  0x9e   :  { %v475_v40 = vpop.f32.mrf.mxu0  ;;  %v515_v41 = vpop.f32.mrf.mxu1 }
  0x9f   :  { %v834_v43 = vadd.f32 %v1653_v42, %v475_v40  ;;  %v850_v44 = vadd.f32 %v1653_v42, %v515_v41 }
  0xa1   :  { %v898_v51 = vmax.f32 %v834_v43, 0.0  ;;  %v914_v52 = vmax.f32 %v850_v44, 0.0 }
  0xa5   :  { %v555_v45 = vpop.f32.mrf.mxu2  ;;  %v595_v46 = vpop.f32.mrf.mxu3 }
  0xa6   :  { %v477_v47 = vpop.f32.mrf.mxu0  ;;  %v517_v48 = vpop.f32.mrf.mxu1  ;;  %v866_v57 = vadd.f32 %v1653_v42, %v555_v45  ;;  %v882_v58 = vadd.f32 %v1653_v42, %v595_v46 }
  0xa7   :  { %v835_v49 = vadd.f32 %v1653_v42, %v477_v47  ;;  %v851_v50 = vadd.f32 %v1653_v42, %v517_v48 }
  0xa8   :  { %v930_v1 = vmax.f32 %v866_v57, 0.0  ;;  %v946_v2 = vmax.f32 %v882_v58, 0.0 }
  0xa9   :  { %v899_v53 = vmax.f32 %v835_v49, 0.0  ;;  %v915_v54 = vmax.f32 %v851_v50, 0.0 }
  0xab   :  { %v1297_v55 = vpack.c.bf16 %v899_v53, %v898_v51  ;;  %v1337_v56 = vpack.c.bf16 %v915_v54, %v914_v52 }
  0xad   :  { %1298 = vst [vmem:[%s1818_s3] sm:$0xff] %v1297_v55   ;;  %v557_v59 = vpop.f32.mrf.mxu2  ;;  %v597_v60 = vpop.f32.mrf.mxu3 }
  0xae   :  { %1461 = vst [vmem:[%s1818_s3 + $0x40] sm:$0xff] %v1337_v56   ;;  %v867_v61 = vadd.f32 %v1653_v42, %v557_v59  ;;  %v883_v62 = vadd.f32 %v1653_v42, %v597_v60  ;;  %v480_v63 = vpop.f32.mrf.mxu0  ;;  %v520_v0 = vpop.f32.mrf.mxu1 }
  0xaf   :  { %v836_v7 = vadd.f32 %v1653_v42, %v480_v63  ;;  %v852_v8 = vadd.f32 %v1653_v42, %v520_v0 }
  0xb0   :  { %v931_v3 = vmax.f32 %v867_v61, 0.0  ;;  %v947_v4 = vmax.f32 %v883_v62, 0.0 }
  0xb1   :  { %v900_v15 = vmax.f32 %v836_v7, 0.0  ;;  %v916_v16 = vmax.f32 %v852_v8, 0.0 }
  0xb2   :  { %v1377_v5 = vpack.c.bf16 %v931_v3, %v930_v1  ;;  %v1417_v6 = vpack.c.bf16 %v947_v4, %v946_v2 }
  0xb4   :  { %1469 = vst [vmem:[%s1818_s3 + $0x80] sm:$0xff] %v1377_v5  }
  0xb5   :  { %1477 = vst [vmem:[%s1818_s3 + $0xc0] sm:$0xff] %v1417_v6   ;;  %v560_v9 = vpop.f32.mrf.mxu2  ;;  %v600_v10 = vpop.f32.mrf.mxu3 }
  0xb6   :  { %v482_v11 = vpop.f32.mrf.mxu0  ;;  %v522_v12 = vpop.f32.mrf.mxu1  ;;  %v868_v21 = vadd.f32 %v1653_v42, %v560_v9  ;;  %v884_v22 = vadd.f32 %v1653_v42, %v600_v10 }
  0xb7   :  { %v837_v13 = vadd.f32 %v1653_v42, %v482_v11  ;;  %v853_v14 = vadd.f32 %v1653_v42, %v522_v12 }
  0xb8   :  { %v932_v29 = vmax.f32 %v868_v21, 0.0  ;;  %v948_v30 = vmax.f32 %v884_v22, 0.0 }
  0xb9   :  { %v901_v17 = vmax.f32 %v837_v13, 0.0  ;;  %v917_v18 = vmax.f32 %v853_v14, 0.0 }
  0xbb   :  { %v1302_v19 = vpack.c.bf16 %v901_v17, %v900_v15  ;;  %v1342_v20 = vpack.c.bf16 %v917_v18, %v916_v16 }
  0xbd   :  { %1454 = vst [vmem:[%s1818_s3 + $0x8] sm:$0xff] %v1302_v19   ;;  %v562_v23 = vpop.f32.mrf.mxu2  ;;  %v602_v24 = vpop.f32.mrf.mxu3 }
  0xbe   :  { %1462 = vst [vmem:[%s1818_s3 + $0x48] sm:$0xff] %v1342_v20   ;;  %v869_v25 = vadd.f32 %v1653_v42, %v562_v23  ;;  %v885_v26 = vadd.f32 %v1653_v42, %v602_v24  ;;  %v485_v27 = vpop.f32.mrf.mxu0  ;;  %v525_v28 = vpop.f32.mrf.mxu1 }
  0xbf   :  { %v838_v35 = vadd.f32 %v1653_v42, %v485_v27  ;;  %v854_v36 = vadd.f32 %v1653_v42, %v525_v28 }
  0xc0   :  { %v933_v31 = vmax.f32 %v869_v25, 0.0  ;;  %v949_v32 = vmax.f32 %v885_v26, 0.0 }
  0xc1   :  { %v902_v44 = vmax.f32 %v838_v35, 0.0  ;;  %v918_v45 = vmax.f32 %v854_v36, 0.0 }
  0xc2   :  { %v1382_v33 = vpack.c.bf16 %v933_v31, %v932_v29  ;;  %v1422_v34 = vpack.c.bf16 %v949_v32, %v948_v30 }
  0xc4   :  { %1470 = vst [vmem:[%s1818_s3 + $0x88] sm:$0xff] %v1382_v33  }
  0xc5   :  { %1478 = vst [vmem:[%s1818_s3 + $0xc8] sm:$0xff] %v1422_v34   ;;  %v565_v37 = vpop.f32.mrf.mxu2  ;;  %v605_v38 = vpop.f32.mrf.mxu3 }
  0xc6   :  { %v487_v39 = vpop.f32.mrf.mxu0  ;;  %v527_v40 = vpop.f32.mrf.mxu1  ;;  %v870_v50 = vadd.f32 %v1653_v42, %v565_v37  ;;  %v886_v51 = vadd.f32 %v1653_v42, %v605_v38 }
  0xc7   :  { %v839_v41 = vadd.f32 %v1653_v42, %v487_v39  ;;  %v855_v43 = vadd.f32 %v1653_v42, %v527_v40 }
  0xc8   :  { %v934_v58 = vmax.f32 %v870_v50, 0.0  ;;  %v950_v59 = vmax.f32 %v886_v51, 0.0 }
  0xc9   :  { %v903_v46 = vmax.f32 %v839_v41, 0.0  ;;  %v919_v47 = vmax.f32 %v855_v43, 0.0 }
  0xcb   :  { %v1307_v48 = vpack.c.bf16 %v903_v46, %v902_v44  ;;  %v1347_v49 = vpack.c.bf16 %v919_v47, %v918_v45 }
  0xcd   :  { %1455 = vst [vmem:[%s1818_s3 + $0x10] sm:$0xff] %v1307_v48   ;;  %v567_v52 = vpop.f32.mrf.mxu2  ;;  %v607_v53 = vpop.f32.mrf.mxu3 }
  0xce   :  { %1463 = vst [vmem:[%s1818_s3 + $0x50] sm:$0xff] %v1347_v49   ;;  %v871_v54 = vadd.f32 %v1653_v42, %v567_v52  ;;  %v887_v55 = vadd.f32 %v1653_v42, %v607_v53  ;;  %v490_v56 = vpop.f32.mrf.mxu0  ;;  %v530_v57 = vpop.f32.mrf.mxu1 }
  0xcf   :  { %v840_v0 = vadd.f32 %v1653_v42, %v490_v56  ;;  %v856_v1 = vadd.f32 %v1653_v42, %v530_v57 }
  0xd0   :  { %v935_v60 = vmax.f32 %v871_v54, 0.0  ;;  %v951_v61 = vmax.f32 %v887_v55, 0.0 }
  0xd1   :  { %v904_v8 = vmax.f32 %v840_v0, 0.0  ;;  %v920_v9 = vmax.f32 %v856_v1, 0.0 }
  0xd2   :  { %v1387_v62 = vpack.c.bf16 %v935_v60, %v934_v58  ;;  %v1427_v63 = vpack.c.bf16 %v951_v61, %v950_v59 }
  0xd4   :  { %1471 = vst [vmem:[%s1818_s3 + $0x90] sm:$0xff] %v1387_v62  }
  0xd5   :  { %1479 = vst [vmem:[%s1818_s3 + $0xd0] sm:$0xff] %v1427_v63   ;;  %v570_v2 = vpop.f32.mrf.mxu2  ;;  %v610_v3 = vpop.f32.mrf.mxu3 }
  0xd6   :  { %v492_v4 = vpop.f32.mrf.mxu0  ;;  %v532_v5 = vpop.f32.mrf.mxu1  ;;  %v872_v14 = vadd.f32 %v1653_v42, %v570_v2  ;;  %v888_v15 = vadd.f32 %v1653_v42, %v610_v3 }
  0xd7   :  { %v841_v6 = vadd.f32 %v1653_v42, %v492_v4  ;;  %v857_v7 = vadd.f32 %v1653_v42, %v532_v5 }
  0xd8   :  { %v936_v22 = vmax.f32 %v872_v14, 0.0  ;;  %v952_v23 = vmax.f32 %v888_v15, 0.0 }
  0xd9   :  { %v905_v10 = vmax.f32 %v841_v6, 0.0  ;;  %v921_v11 = vmax.f32 %v857_v7, 0.0 }
  0xdb   :  { %v1312_v12 = vpack.c.bf16 %v905_v10, %v904_v8  ;;  %v1352_v13 = vpack.c.bf16 %v921_v11, %v920_v9 }
  0xdd   :  { %1456 = vst [vmem:[%s1818_s3 + $0x18] sm:$0xff] %v1312_v12   ;;  %v572_v16 = vpop.f32.mrf.mxu2  ;;  %v612_v17 = vpop.f32.mrf.mxu3 }
  0xde   :  { %1464 = vst [vmem:[%s1818_s3 + $0x58] sm:$0xff] %v1352_v13   ;;  %v873_v18 = vadd.f32 %v1653_v42, %v572_v16  ;;  %v889_v19 = vadd.f32 %v1653_v42, %v612_v17  ;;  %v495_v20 = vpop.f32.mrf.mxu0  ;;  %v535_v21 = vpop.f32.mrf.mxu1 }
  0xdf   :  { %v842_v28 = vadd.f32 %v1653_v42, %v495_v20  ;;  %v858_v29 = vadd.f32 %v1653_v42, %v535_v21 }
  0xe0   :  { %v937_v24 = vmax.f32 %v873_v18, 0.0  ;;  %v953_v25 = vmax.f32 %v889_v19, 0.0 }
  0xe1   :  { %v906_v36 = vmax.f32 %v842_v28, 0.0  ;;  %v922_v37 = vmax.f32 %v858_v29, 0.0 }
  0xe2   :  { %v1392_v26 = vpack.c.bf16 %v937_v24, %v936_v22  ;;  %v1432_v27 = vpack.c.bf16 %v953_v25, %v952_v23 }
  0xe4   :  { %1472 = vst [vmem:[%s1818_s3 + $0x98] sm:$0xff] %v1392_v26  }
  0xe5   :  { %1480 = vst [vmem:[%s1818_s3 + $0xd8] sm:$0xff] %v1432_v27   ;;  %v575_v30 = vpop.f32.mrf.mxu2  ;;  %v615_v31 = vpop.f32.mrf.mxu3 }
  0xe6   :  { %v497_v32 = vpop.f32.mrf.mxu0  ;;  %v537_v33 = vpop.f32.mrf.mxu1  ;;  %v874_v43 = vadd.f32 %v1653_v42, %v575_v30  ;;  %v890_v44 = vadd.f32 %v1653_v42, %v615_v31 }
  0xe7   :  { %v843_v34 = vadd.f32 %v1653_v42, %v497_v32  ;;  %v859_v35 = vadd.f32 %v1653_v42, %v537_v33 }
  0xe8   :  { %v938_v51 = vmax.f32 %v874_v43, 0.0  ;;  %v954_v52 = vmax.f32 %v890_v44, 0.0 }
  0xe9   :  { %v907_v38 = vmax.f32 %v843_v34, 0.0  ;;  %v923_v39 = vmax.f32 %v859_v35, 0.0 }
  0xeb   :  { %v1317_v40 = vpack.c.bf16 %v907_v38, %v906_v36  ;;  %v1357_v41 = vpack.c.bf16 %v923_v39, %v922_v37 }
  0xed   :  { %1457 = vst [vmem:[%s1818_s3 + $0x20] sm:$0xff] %v1317_v40   ;;  %v577_v45 = vpop.f32.mrf.mxu2  ;;  %v617_v46 = vpop.f32.mrf.mxu3 }
  0xee   :  { %1465 = vst [vmem:[%s1818_s3 + $0x60] sm:$0xff] %v1357_v41   ;;  %v875_v47 = vadd.f32 %v1653_v42, %v577_v45  ;;  %v891_v48 = vadd.f32 %v1653_v42, %v617_v46  ;;  %v500_v49 = vpop.f32.mrf.mxu0  ;;  %v540_v50 = vpop.f32.mrf.mxu1 }
  0xef   :  { %v844_v57 = vadd.f32 %v1653_v42, %v500_v49  ;;  %v860_v58 = vadd.f32 %v1653_v42, %v540_v50 }
  0xf0   :  { %v939_v53 = vmax.f32 %v875_v47, 0.0  ;;  %v955_v54 = vmax.f32 %v891_v48, 0.0 }
  0xf1   :  { %v908_v1 = vmax.f32 %v844_v57, 0.0  ;;  %v924_v2 = vmax.f32 %v860_v58, 0.0 }
  0xf2   :  { %v1397_v55 = vpack.c.bf16 %v939_v53, %v938_v51  ;;  %v1437_v56 = vpack.c.bf16 %v955_v54, %v954_v52 }
  0xf4   :  { %1473 = vst [vmem:[%s1818_s3 + $0xa0] sm:$0xff] %v1397_v55  }
  0xf5   :  { %1481 = vst [vmem:[%s1818_s3 + $0xe0] sm:$0xff] %v1437_v56   ;;  %v580_v59 = vpop.f32.mrf.mxu2  ;;  %v620_v60 = vpop.f32.mrf.mxu3 }
  0xf6   :  { %v502_v61 = vpop.f32.mrf.mxu0  ;;  %v542_v62 = vpop.f32.mrf.mxu1  ;;  %v876_v7 = vadd.f32 %v1653_v42, %v580_v59  ;;  %v892_v8 = vadd.f32 %v1653_v42, %v620_v60 }
  0xf7   :  { %v845_v63 = vadd.f32 %v1653_v42, %v502_v61  ;;  %v861_v0 = vadd.f32 %v1653_v42, %v542_v62 }
  0xf8   :  { %v940_v15 = vmax.f32 %v876_v7, 0.0  ;;  %v956_v16 = vmax.f32 %v892_v8, 0.0 }
  0xf9   :  { %v909_v3 = vmax.f32 %v845_v63, 0.0  ;;  %v925_v4 = vmax.f32 %v861_v0, 0.0 }
  0xfb   :  { %v1322_v5 = vpack.c.bf16 %v909_v3, %v908_v1  ;;  %v1362_v6 = vpack.c.bf16 %v925_v4, %v924_v2 }
  0xfd   :  { %1458 = vst [vmem:[%s1818_s3 + $0x28] sm:$0xff] %v1322_v5   ;;  %v582_v9 = vpop.f32.mrf.mxu2  ;;  %v622_v10 = vpop.f32.mrf.mxu3 }
  0xfe   :  { %1466 = vst [vmem:[%s1818_s3 + $0x68] sm:$0xff] %v1362_v6   ;;  %v877_v11 = vadd.f32 %v1653_v42, %v582_v9  ;;  %v893_v12 = vadd.f32 %v1653_v42, %v622_v10  ;;  %v505_v13 = vpop.f32.mrf.mxu0  ;;  %v545_v14 = vpop.f32.mrf.mxu1 }
  0xff   :  { %v846_v21 = vadd.f32 %v1653_v42, %v505_v13  ;;  %v862_v22 = vadd.f32 %v1653_v42, %v545_v14 }
 0x100   :  { %v941_v17 = vmax.f32 %v877_v11, 0.0  ;;  %v957_v18 = vmax.f32 %v893_v12, 0.0 }
 0x101   :  { %v910_v29 = vmax.f32 %v846_v21, 0.0  ;;  %v926_v30 = vmax.f32 %v862_v22, 0.0 }
 0x102   :  { %v1402_v19 = vpack.c.bf16 %v941_v17, %v940_v15  ;;  %v1442_v20 = vpack.c.bf16 %v957_v18, %v956_v16 }
 0x104   :  { %1474 = vst [vmem:[%s1818_s3 + $0xa8] sm:$0xff] %v1402_v19  }
 0x105   :  { %1482 = vst [vmem:[%s1818_s3 + $0xe8] sm:$0xff] %v1442_v20   ;;  %v585_v23 = vpop.f32.mrf.mxu2  ;;  %v625_v24 = vpop.f32.mrf.mxu3 }
 0x106   :  { %v507_v25 = vpop.f32.mrf.mxu0  ;;  %v547_v26 = vpop.f32.mrf.mxu1  ;;  %v878_v35 = vadd.f32 %v1653_v42, %v585_v23  ;;  %v894_v36 = vadd.f32 %v1653_v42, %v625_v24 }
 0x107   :  { %v847_v27 = vadd.f32 %v1653_v42, %v507_v25  ;;  %v863_v28 = vadd.f32 %v1653_v42, %v547_v26 }
 0x108   :  { %v942_v44 = vmax.f32 %v878_v35, 0.0  ;;  %v958_v45 = vmax.f32 %v894_v36, 0.0 }
 0x109   :  { %v911_v31 = vmax.f32 %v847_v27, 0.0  ;;  %v927_v32 = vmax.f32 %v863_v28, 0.0 }
 0x10b   :  { %v1327_v33 = vpack.c.bf16 %v911_v31, %v910_v29  ;;  %v1367_v34 = vpack.c.bf16 %v927_v32, %v926_v30 }
 0x10d   :  { %1459 = vst [vmem:[%s1818_s3 + $0x30] sm:$0xff] %v1327_v33   ;;  %v587_v37 = vpop.f32.mrf.mxu2  ;;  %v627_v38 = vpop.f32.mrf.mxu3 }
 0x10e   :  { %1467 = vst [vmem:[%s1818_s3 + $0x70] sm:$0xff] %v1367_v34   ;;  %v879_v39 = vadd.f32 %v1653_v42, %v587_v37  ;;  %v895_v40 = vadd.f32 %v1653_v42, %v627_v38  ;;  %v510_v41 = vpop.f32.mrf.mxu0  ;;  %v550_v43 = vpop.f32.mrf.mxu1 }
 0x10f   :  { %v848_v50 = vadd.f32 %v1653_v42, %v510_v41  ;;  %v864_v51 = vadd.f32 %v1653_v42, %v550_v43 }
 0x110   :  { %v943_v46 = vmax.f32 %v879_v39, 0.0  ;;  %v959_v47 = vmax.f32 %v895_v40, 0.0 }
 0x111   :  { %v912_v58 = vmax.f32 %v848_v50, 0.0  ;;  %v928_v59 = vmax.f32 %v864_v51, 0.0 }
 0x112   :  { %v1407_v48 = vpack.c.bf16 %v943_v46, %v942_v44  ;;  %v1447_v49 = vpack.c.bf16 %v959_v47, %v958_v45 }
 0x114   :  { %1475 = vst [vmem:[%s1818_s3 + $0xb0] sm:$0xff] %v1407_v48  }
 0x115   :  { %1483 = vst [vmem:[%s1818_s3 + $0xf0] sm:$0xff] %v1447_v49   ;;  %v590_v52 = vpop.f32.mrf.mxu2  ;;  %v630_v53 = vpop.f32.mrf.mxu3 }
 0x116   :  { %v512_v54 = vpop.f32.mrf.mxu0  ;;  %v552_v55 = vpop.f32.mrf.mxu1  ;;  %v880_v0 = vadd.f32 %v1653_v42, %v590_v52  ;;  %v896_v1 = vadd.f32 %v1653_v42, %v630_v53 }
 0x117   :  { %v849_v56 = vadd.f32 %v1653_v42, %v512_v54  ;;  %v865_v57 = vadd.f32 %v1653_v42, %v552_v55 }
 0x118   :  { %v944_v6 = vmax.f32 %v880_v0, 0.0  ;;  %v960_v7 = vmax.f32 %v896_v1, 0.0 }
 0x119   :  { %v913_v60 = vmax.f32 %v849_v56, 0.0  ;;  %v929_v61 = vmax.f32 %v865_v57, 0.0 }
 0x11b   :  { %v1332_v62 = vpack.c.bf16 %v913_v60, %v912_v58  ;;  %v1372_v63 = vpack.c.bf16 %v929_v61, %v928_v59 }
 0x11d   :  { %1460 = vst [vmem:[%s1818_s3 + $0x38] sm:$0xff] %v1332_v62   ;;  %v592_v2 = vpop.f32.mrf.mxu2  ;;  %v632_v3 = vpop.f32.mrf.mxu3 }
 0x11e   :  { %1468 = vst [vmem:[%s1818_s3 + $0x78] sm:$0xff] %v1372_v63   ;;  %v881_v4 = vadd.f32 %v1653_v42, %v592_v2  ;;  %v897_v5 = vadd.f32 %v1653_v42, %v632_v3 }
 0x120   :  { %v945_v8 = vmax.f32 %v881_v4, 0.0  ;;  %v961_v9 = vmax.f32 %v897_v5, 0.0 }
 0x122   :  { %v1412_v10 = vpack.c.bf16 %v945_v8, %v944_v6  ;;  %v1452_v11 = vpack.c.bf16 %v961_v9, %v960_v7 }
 0x124   :  { %1476 = vst [vmem:[%s1818_s3 + $0xb8] sm:$0xff] %v1412_v10  }
 0x125   :  { %1484 = vst [vmem:[%s1818_s3 + $0xf8] sm:$0xff] %v1452_v11  }

// kernel: bottleneck_forward.4
= control target key start
LH: loop header
LB: loop body
LE: loop exit
PB: predicated region body
PF: predicated region fallthrough
CT: control target
= control target key end

     0   :  { %s597_s1 = inlined_call_operand.vmem [shape: bf16[128,128], index: 1, kind: input, shape index: {}]   ;;  %s598_s2 = inlined_call_operand.vmem [shape: f32[1,128], index: 2, kind: input, shape index: {}]   ;;  %s599_s0 = inlined_call_operand.vmem [shape: bf16[128,128], index: 0, kind: input, shape index: {}]   ;;  %s600_s3 = inlined_call_operand.vmem [shape: bf16[128,128], index: 3, kind: output, shape index: {}]  }
   0x1   :  { %v429_v0 = vld [vmem:[%s597_s1 + $0x38] sm:$0xff]  ;;  %v428_v1 = vld [vmem:[%s597_s1 + $0x30] sm:$0xff]  ;;  %v427_v2 = vld [vmem:[%s597_s1 + $0x28] sm:$0xff] }
   0x2   :  { %178 = vmatpush.bf16.msra.mxu0 %v429_v0  ;;  %477 = vmatpush.bf16.msra.mxu1 %v429_v0  ;;  %v426_v3 = vld [vmem:[%s597_s1 + $0x20] sm:$0xff]  ;;  %v425_v4 = vld [vmem:[%s597_s1 + $0x18] sm:$0xff]  ;;  %v424_v5 = vld [vmem:[%s597_s1 + $0x10] sm:$0xff] }
   0x3   :  { %478 = vmatpush.bf16.msra.mxu2 %v429_v0  ;;  %479 = vmatpush.bf16.msra.mxu3 %v429_v0  ;;  %v423_v6 = vld [vmem:[%s597_s1 + $0x8] sm:$0xff]  ;;  %v422_v7 = vld [vmem:[%s597_s1] sm:$0xff]  ;;  %v416_v9 = vld [vmem:[%s599_s0 + $0x10] sm:$0xff] }
   0x4   :  { %v414_v8 = vld [vmem:[%s599_s0] sm:$0xff]  ;;  %v420_v11 = vld [vmem:[%s599_s0 + $0x30] sm:$0xff]  ;;  %v415_v12 = vld [vmem:[%s599_s0 + $0x8] sm:$0xff] }
   0x5   :  { %v418_v10 = vld [vmem:[%s599_s0 + $0x20] sm:$0xff]  ;;  %v417_v13 = vld [vmem:[%s599_s0 + $0x18] sm:$0xff]  ;;  %v419_v14 = vld [vmem:[%s599_s0 + $0x28] sm:$0xff] }
   0x6   :  { %179 = vmatpush.bf16.msra.mxu0 %v428_v1  ;;  %480 = vmatpush.bf16.msra.mxu1 %v428_v1  ;;  %v421_v15 = vld [vmem:[%s599_s0 + $0x38] sm:$0xff]  ;;  %v501_v18 = vld [vmem:[%s598_s2] ss:$0 sm:$0xff] }
   0x7   :  { %481 = vmatpush.bf16.msra.mxu2 %v428_v1  ;;  %482 = vmatpush.bf16.msra.mxu3 %v428_v1 }
   0xa   :  { %180 = vmatpush.bf16.msra.mxu0 %v427_v2  ;;  %483 = vmatpush.bf16.msra.mxu1 %v427_v2 }
   0xb   :  { %484 = vmatpush.bf16.msra.mxu2 %v427_v2  ;;  %485 = vmatpush.bf16.msra.mxu3 %v427_v2 }
   0xe   :  { %181 = vmatpush.bf16.msra.mxu0 %v426_v3  ;;  %486 = vmatpush.bf16.msra.mxu1 %v426_v3 }
   0xf   :  { %487 = vmatpush.bf16.msra.mxu2 %v426_v3  ;;  %488 = vmatpush.bf16.msra.mxu3 %v426_v3 }
  0x12   :  { %182 = vmatpush.bf16.msra.mxu0 %v425_v4  ;;  %489 = vmatpush.bf16.msra.mxu1 %v425_v4 }
  0x13   :  { %490 = vmatpush.bf16.msra.mxu2 %v425_v4  ;;  %491 = vmatpush.bf16.msra.mxu3 %v425_v4 }
  0x16   :  { %183 = vmatpush.bf16.msra.mxu0 %v424_v5  ;;  %492 = vmatpush.bf16.msra.mxu1 %v424_v5 }
  0x17   :  { %493 = vmatpush.bf16.msra.mxu2 %v424_v5  ;;  %494 = vmatpush.bf16.msra.mxu3 %v424_v5 }
  0x1a   :  { %184 = vmatpush.bf16.msra.mxu0 %v423_v6  ;;  %495 = vmatpush.bf16.msra.mxu1 %v423_v6 }
  0x1b   :  { %496 = vmatpush.bf16.msra.mxu2 %v423_v6  ;;  %497 = vmatpush.bf16.msra.mxu3 %v423_v6 }
  0x1e   :  { %185 = vmatpush.bf16.msra.mxu0 %v422_v7  ;;  %498 = vmatpush.bf16.msra.mxu1 %v422_v7 }
  0x1f   :  { %499 = vmatpush.bf16.msra.mxu2 %v422_v7  ;;  %500 = vmatpush.bf16.msra.mxu3 %v422_v7 }
  0x21   :  { %186 = vmatmul.bf16.vlgmr.msra.gmra.mxu0 %v414_v8  ;;  %196 = vmatmul.bf16.vlgmr.msra.gmra.mxu1 %v416_v9 }
  0x22   :  { %206 = vmatmul.bf16.vlgmr.msra.gmra.mxu2 %v418_v10  ;;  %216 = vmatmul.bf16.vlgmr.msra.gmra.mxu3 %v420_v11 }
  0x31   :  { %191 = vmatmul.bf16.gmra.mxu0 %v415_v12  ;;  %201 = vmatmul.bf16.gmra.mxu1 %v417_v13 }
  0x32   :  { %211 = vmatmul.bf16.gmra.mxu2 %v419_v14  ;;  %221 = vmatmul.bf16.gmra.mxu3 %v421_v15 }
  0x9e   :  { %v187_v16 = vpop.f32.mrf.mxu0  ;;  %v197_v17 = vpop.f32.mrf.mxu1 }
  0x9f   :  { %v282_v19 = vadd.f32 %v501_v18, %v187_v16  ;;  %v286_v20 = vadd.f32 %v501_v18, %v197_v17 }
  0xa1   :  { %v298_v27 = vmax.f32 %v282_v19, 0.0  ;;  %v302_v28 = vmax.f32 %v286_v20, 0.0 }
  0xa5   :  { %v207_v21 = vpop.f32.mrf.mxu2  ;;  %v217_v22 = vpop.f32.mrf.mxu3 }
  0xa6   :  { %v189_v23 = vpop.f32.mrf.mxu0  ;;  %v199_v24 = vpop.f32.mrf.mxu1  ;;  %v290_v33 = vadd.f32 %v501_v18, %v207_v21  ;;  %v294_v34 = vadd.f32 %v501_v18, %v217_v22 }
  0xa7   :  { %v283_v25 = vadd.f32 %v501_v18, %v189_v23  ;;  %v287_v26 = vadd.f32 %v501_v18, %v199_v24 }
  0xa8   :  { %v306_v41 = vmax.f32 %v290_v33, 0.0  ;;  %v310_v42 = vmax.f32 %v294_v34, 0.0 }
  0xa9   :  { %v299_v29 = vmax.f32 %v283_v25, 0.0  ;;  %v303_v30 = vmax.f32 %v287_v26, 0.0 }
  0xab   :  { %v433_v31 = vpack.c.bf16 %v299_v29, %v298_v27  ;;  %v443_v32 = vpack.c.bf16 %v303_v30, %v302_v28 }
  0xad   :  { %434 = vst [vmem:[%s600_s3] sm:$0xff] %v433_v31   ;;  %v209_v35 = vpop.f32.mrf.mxu2  ;;  %v219_v36 = vpop.f32.mrf.mxu3 }
  0xae   :  { %471 = vst [vmem:[%s600_s3 + $0x10] sm:$0xff] %v443_v32   ;;  %v291_v37 = vadd.f32 %v501_v18, %v209_v35  ;;  %v295_v38 = vadd.f32 %v501_v18, %v219_v36  ;;  %v192_v39 = vpop.f32.mrf.mxu0  ;;  %v202_v40 = vpop.f32.mrf.mxu1 }
  0xaf   :  { %v284_v47 = vadd.f32 %v501_v18, %v192_v39  ;;  %v288_v48 = vadd.f32 %v501_v18, %v202_v40 }
  0xb0   :  { %v307_v43 = vmax.f32 %v291_v37, 0.0  ;;  %v311_v44 = vmax.f32 %v295_v38, 0.0 }
  0xb1   :  { %v300_v55 = vmax.f32 %v284_v47, 0.0  ;;  %v304_v56 = vmax.f32 %v288_v48, 0.0 }
  0xb2   :  { %v453_v45 = vpack.c.bf16 %v307_v43, %v306_v41  ;;  %v463_v46 = vpack.c.bf16 %v311_v44, %v310_v42 }
  0xb4   :  { %473 = vst [vmem:[%s600_s3 + $0x20] sm:$0xff] %v453_v45  }
  0xb5   :  { %475 = vst [vmem:[%s600_s3 + $0x30] sm:$0xff] %v463_v46   ;;  %v212_v49 = vpop.f32.mrf.mxu2  ;;  %v222_v50 = vpop.f32.mrf.mxu3 }
  0xb6   :  { %v194_v51 = vpop.f32.mrf.mxu0  ;;  %v204_v52 = vpop.f32.mrf.mxu1  ;;  %v292_v61 = vadd.f32 %v501_v18, %v212_v49  ;;  %v296_v62 = vadd.f32 %v501_v18, %v222_v50 }
  0xb7   :  { %v285_v53 = vadd.f32 %v501_v18, %v194_v51  ;;  %v289_v54 = vadd.f32 %v501_v18, %v204_v52 }
  0xb8   :  { %v308_v3 = vmax.f32 %v292_v61, 0.0  ;;  %v312_v4 = vmax.f32 %v296_v62, 0.0 }
  0xb9   :  { %v301_v57 = vmax.f32 %v285_v53, 0.0  ;;  %v305_v58 = vmax.f32 %v289_v54, 0.0 }
  0xbb   :  { %v438_v59 = vpack.c.bf16 %v301_v57, %v300_v55  ;;  %v448_v60 = vpack.c.bf16 %v305_v58, %v304_v56 }
  0xbd   :  { %470 = vst [vmem:[%s600_s3 + $0x8] sm:$0xff] %v438_v59   ;;  %v214_v63 = vpop.f32.mrf.mxu2  ;;  %v224_v0 = vpop.f32.mrf.mxu3 }
  0xbe   :  { %472 = vst [vmem:[%s600_s3 + $0x18] sm:$0xff] %v448_v60   ;;  %v293_v1 = vadd.f32 %v501_v18, %v214_v63  ;;  %v297_v2 = vadd.f32 %v501_v18, %v224_v0 }
  0xc0   :  { %v309_v5 = vmax.f32 %v293_v1, 0.0  ;;  %v313_v6 = vmax.f32 %v297_v2, 0.0 }
  0xc2   :  { %v458_v7 = vpack.c.bf16 %v309_v5, %v308_v3  ;;  %v468_v8 = vpack.c.bf16 %v313_v6, %v312_v4 }
  0xc4   :  { %474 = vst [vmem:[%s600_s3 + $0x28] sm:$0xff] %v458_v7  }
  0xc5   :  { %476 = vst [vmem:[%s600_s3 + $0x38] sm:$0xff] %v468_v8  }

// kernel: bottleneck_forward.5
= control target key start
LH: loop header
LB: loop body
LE: loop exit
PB: predicated region body
PF: predicated region fallthrough
CT: control target
= control target key end

     0   :  { %s804_s0 = inlined_call_operand.vmem [shape: bf16[128,128], index: 0, kind: input, shape index: {}]   ;;  %s805_s1 = inlined_call_operand.vmem [shape: bf16[128,128], index: 1, kind: input, shape index: {}]   ;;  %s806_s2 = inlined_call_operand.vmem [shape: bf16[128,128], index: 2, kind: input, shape index: {}]   ;;  %s807_s3 = inlined_call_operand.vmem [shape: bf16[128,128], index: 3, kind: input, shape index: {}]   ;;  %s808_s4 = inlined_call_operand.vmem [shape: f32[1,128], index: 4, kind: input, shape index: {}]   ;;  %s809_s5 = inlined_call_operand.hbm [shape: f32[128,128], index: 5, kind: output, shape index: {}]  }
   0x1   :  { %v604_v0 = vld [vmem:[%s807_s3 + $0x38] sm:$0xff]  ;;  %v603_v2 = vld [vmem:[%s807_s3 + $0x30] sm:$0xff]  ;;  %v602_v4 = vld [vmem:[%s807_s3 + $0x28] sm:$0xff] }
   0x2   :  { %v588_v1 = vld [vmem:[%s805_s1 + $0x38] sm:$0xff]  ;;  %181 = vmatpush.bf16.msra.mxu0 %v604_v0  ;;  %605 = vmatpush.bf16.msra.mxu2 %v604_v0  ;;  %v587_v3 = vld [vmem:[%s805_s1 + $0x30] sm:$0xff]  ;;  %v586_v5 = vld [vmem:[%s805_s1 + $0x28] sm:$0xff] }
   0x3   :  { %326 = vmatpush.bf16.msra.mxu1 %v588_v1  ;;  %613 = vmatpush.bf16.msra.mxu3 %v588_v1 }
   0x6   :  { %182 = vmatpush.bf16.msra.mxu0 %v603_v2  ;;  %606 = vmatpush.bf16.msra.mxu2 %v603_v2 }
   0x7   :  { %327 = vmatpush.bf16.msra.mxu1 %v587_v3  ;;  %614 = vmatpush.bf16.msra.mxu3 %v587_v3 }
   0x8   :  { %10 = vsyncpa [#allocation3], 0  ;;  %v601_v6 = vld [vmem:[%s807_s3 + $0x20] sm:$0xff]  ;;  %v600_v8 = vld [vmem:[%s807_s3 + $0x18] sm:$0xff]  ;;  %s652_s7 = smov 128   ;;  %s653_s8 = smov 8  }
   0x9   :  { %v585_v7 = vld [vmem:[%s805_s1 + $0x20] sm:$0xff]  ;;  %v584_v9 = vld [vmem:[%s805_s1 + $0x18] sm:$0xff]  ;;  %v599_v10 = vld [vmem:[%s807_s3 + $0x10] sm:$0xff] }
   0xa   :  { %183 = vmatpush.bf16.msra.mxu0 %v602_v4  ;;  %607 = vmatpush.bf16.msra.mxu2 %v602_v4  ;;  %v583_v11 = vld [vmem:[%s805_s1 + $0x10] sm:$0xff]  ;;  %v598_v12 = vld [vmem:[%s807_s3 + $0x8] sm:$0xff]  ;;  %v597_v14 = vld [vmem:[%s807_s3] sm:$0xff] }
   0xb   :  { %328 = vmatpush.bf16.msra.mxu1 %v586_v5  ;;  %615 = vmatpush.bf16.msra.mxu3 %v586_v5  ;;  %v582_v13 = vld [vmem:[%s805_s1 + $0x8] sm:$0xff]  ;;  %v581_v15 = vld [vmem:[%s805_s1] sm:$0xff]  ;;  %v591_v24 = vld [vmem:[%s806_s2 + $0x10] sm:$0xff]  ;;  %s433_s1 = sshll.u32 %s809_s5, 4  ;;  %s434_s1 = int_to_ptr.hbm [resolvable:$true] %s433_s1 }
   0xc   :  { %v589_v16 = vld [vmem:[%s806_s2] sm:$0xff]  ;;  %v590_v20 = vld [vmem:[%s806_s2 + $0x8] sm:$0xff]  ;;  %v595_v25 = vld [vmem:[%s806_s2 + $0x30] sm:$0xff] }
   0xd   :  { %v593_v17 = vld [vmem:[%s806_s2 + $0x20] sm:$0xff]  ;;  %v594_v21 = vld [vmem:[%s806_s2 + $0x28] sm:$0xff]  ;;  %v575_v26 = vld [vmem:[%s804_s0 + $0x10] sm:$0xff] }
   0xe   :  { %184 = vmatpush.bf16.msra.mxu0 %v601_v6  ;;  %608 = vmatpush.bf16.msra.mxu2 %v601_v6  ;;  %v573_v18 = vld [vmem:[%s804_s0] sm:$0xff]  ;;  %v574_v22 = vld [vmem:[%s804_s0 + $0x8] sm:$0xff]  ;;  %v579_v27 = vld [vmem:[%s804_s0 + $0x30] sm:$0xff] }
   0xf   :  { %329 = vmatpush.bf16.msra.mxu1 %v585_v7  ;;  %616 = vmatpush.bf16.msra.mxu3 %v585_v7  ;;  %v577_v19 = vld [vmem:[%s804_s0 + $0x20] sm:$0xff]  ;;  %v578_v23 = vld [vmem:[%s804_s0 + $0x28] sm:$0xff]  ;;  %v592_v28 = vld [vmem:[%s806_s2 + $0x18] sm:$0xff] }
  0x10   :  { %v596_v29 = vld [vmem:[%s806_s2 + $0x38] sm:$0xff]  ;;  %v783_v33 = vld [vmem:[%s808_s4] ss:$0 sm:$0xff] }
  0x11   :  { %v576_v30 = vld [vmem:[%s804_s0 + $0x18] sm:$0xff] }
  0x12   :  { %185 = vmatpush.bf16.msra.mxu0 %v600_v8  ;;  %609 = vmatpush.bf16.msra.mxu2 %v600_v8  ;;  %v580_v31 = vld [vmem:[%s804_s0 + $0x38] sm:$0xff]  ;;  %s651_s0 = smov [#allocation2]  }
  0x13   :  { %330 = vmatpush.bf16.msra.mxu1 %v584_v9  ;;  %617 = vmatpush.bf16.msra.mxu3 %v584_v9  ;;  %s431_s2 = sshll.u32 %s651_s0, 4  ;;  %s432_s2 = int_to_ptr.vmem [resolvable:$true] %s431_s2 }
  0x16   :  { %186 = vmatpush.bf16.msra.mxu0 %v599_v10  ;;  %610 = vmatpush.bf16.msra.mxu2 %v599_v10 }
  0x17   :  { %331 = vmatpush.bf16.msra.mxu1 %v583_v11  ;;  %618 = vmatpush.bf16.msra.mxu3 %v583_v11 }
  0x1a   :  { %187 = vmatpush.bf16.msra.mxu0 %v598_v12  ;;  %611 = vmatpush.bf16.msra.mxu2 %v598_v12 }
  0x1b   :  { %332 = vmatpush.bf16.msra.mxu1 %v582_v13  ;;  %619 = vmatpush.bf16.msra.mxu3 %v582_v13 }
  0x1e   :  { %188 = vmatpush.bf16.msra.mxu0 %v597_v14  ;;  %612 = vmatpush.bf16.msra.mxu2 %v597_v14 }
  0x1f   :  { %333 = vmatpush.bf16.msra.mxu1 %v581_v15  ;;  %620 = vmatpush.bf16.msra.mxu3 %v581_v15 }
  0x21   :  { %189 = vmatmul.bf16.vlgmr.msra.gmra.mxu0 %v589_v16  ;;  %209 = vmatmul.bf16.vlgmr.msra.gmra.mxu2 %v593_v17 }
  0x22   :  { %334 = vmatmul.bf16.vlgmr.msra.gmra.mxu1 %v573_v18  ;;  %354 = vmatmul.bf16.vlgmr.msra.gmra.mxu3 %v577_v19 }
  0x31   :  { %194 = vmatmul.bf16.gmra.mxu0 %v590_v20  ;;  %214 = vmatmul.bf16.gmra.mxu2 %v594_v21 }
  0x32   :  { %339 = vmatmul.bf16.gmra.mxu1 %v574_v22  ;;  %359 = vmatmul.bf16.gmra.mxu3 %v578_v23 }
  0x41   :  { %199 = vmatmul.bf16.gmra.mxu0 %v591_v24  ;;  %219 = vmatmul.bf16.gmra.mxu2 %v595_v25 }
  0x42   :  { %344 = vmatmul.bf16.gmra.mxu1 %v575_v26  ;;  %364 = vmatmul.bf16.gmra.mxu3 %v579_v27 }
  0x51   :  { %204 = vmatmul.bf16.gmra.mxu0 %v592_v28  ;;  %224 = vmatmul.bf16.gmra.mxu2 %v596_v29 }
  0x52   :  { %349 = vmatmul.bf16.gmra.mxu1 %v576_v30  ;;  %369 = vmatmul.bf16.gmra.mxu3 %v580_v31 }
  0x9e   :  { %v190_v32 = vpop.f32.mrf.mxu0 }
  0x9f   :  { %v335_v34 = vpop.f32.mrf.mxu1 }
  0xa0   :  { %v336_v35 = vadd.f32 %v335_v34, %v190_v32 }
  0xa2   :  { %v379_v36 = vadd.f32 %v783_v33, %v336_v35 }
  0xa4   :  { %v395_v37 = vmax.f32 %v379_v36, 0.0  ;;  %v210_v38 = vpop.f32.mrf.mxu2 }
  0xa5   :  { %v355_v39 = vpop.f32.mrf.mxu3 }
  0xa6   :  { %411 = vst [vmem:[#allocation2] sm:$0xff] %v395_v37  ;;  %v356_v40 = vadd.f32 %v355_v39, %v210_v38  ;;  %v192_v41 = vpop.f32.mrf.mxu0 }
  0xa7   :  { %v337_v42 = vpop.f32.mrf.mxu1 }
  0xa8   :  { %v387_v43 = vadd.f32 %v783_v33, %v356_v40  ;;  %v338_v44 = vadd.f32 %v337_v42, %v192_v41 }
  0xaa   :  { %v403_v45 = vmax.f32 %v387_v43, 0.0  ;;  %v380_v46 = vadd.f32 %v783_v33, %v338_v44 }
  0xac   :  { %419 = vst [vmem:[#allocation2 + $0x40] sm:$0xff] %v403_v45  ;;  %v396_v47 = vmax.f32 %v380_v46, 0.0  ;;  %v212_v48 = vpop.f32.mrf.mxu2 }
  0xad   :  { %v357_v49 = vpop.f32.mrf.mxu3 }
  0xae   :  { %412 = vst [vmem:[#allocation2 + $0x8] sm:$0xff] %v396_v47  ;;  %v358_v50 = vadd.f32 %v357_v49, %v212_v48  ;;  %v195_v51 = vpop.f32.mrf.mxu0 }
  0xaf   :  { %v340_v52 = vpop.f32.mrf.mxu1 }
  0xb0   :  { %v388_v53 = vadd.f32 %v783_v33, %v358_v50  ;;  %v341_v54 = vadd.f32 %v340_v52, %v195_v51 }
  0xb2   :  { %v404_v55 = vmax.f32 %v388_v53, 0.0  ;;  %v381_v56 = vadd.f32 %v783_v33, %v341_v54 }
  0xb4   :  { %420 = vst [vmem:[#allocation2 + $0x48] sm:$0xff] %v404_v55  ;;  %v397_v57 = vmax.f32 %v381_v56, 0.0  ;;  %v215_v58 = vpop.f32.mrf.mxu2 }
  0xb5   :  { %v360_v59 = vpop.f32.mrf.mxu3 }
  0xb6   :  { %413 = vst [vmem:[#allocation2 + $0x10] sm:$0xff] %v397_v57  ;;  %v361_v60 = vadd.f32 %v360_v59, %v215_v58  ;;  %v197_v61 = vpop.f32.mrf.mxu0 }
  0xb7   :  { %v342_v62 = vpop.f32.mrf.mxu1 }
  0xb8   :  { %v389_v63 = vadd.f32 %v783_v33, %v361_v60  ;;  %v343_v0 = vadd.f32 %v342_v62, %v197_v61 }
  0xba   :  { %v405_v1 = vmax.f32 %v389_v63, 0.0  ;;  %v382_v2 = vadd.f32 %v783_v33, %v343_v0 }
  0xbc   :  { %421 = vst [vmem:[#allocation2 + $0x50] sm:$0xff] %v405_v1  ;;  %v398_v3 = vmax.f32 %v382_v2, 0.0  ;;  %v217_v4 = vpop.f32.mrf.mxu2 }
  0xbd   :  { %v362_v5 = vpop.f32.mrf.mxu3 }
  0xbe   :  { %414 = vst [vmem:[#allocation2 + $0x18] sm:$0xff] %v398_v3  ;;  %v363_v6 = vadd.f32 %v362_v5, %v217_v4  ;;  %v200_v7 = vpop.f32.mrf.mxu0 }
  0xbf   :  { %v345_v8 = vpop.f32.mrf.mxu1 }
  0xc0   :  { %v390_v9 = vadd.f32 %v783_v33, %v363_v6  ;;  %v346_v10 = vadd.f32 %v345_v8, %v200_v7 }
  0xc2   :  { %v406_v11 = vmax.f32 %v390_v9, 0.0  ;;  %v383_v12 = vadd.f32 %v783_v33, %v346_v10 }
  0xc4   :  { %422 = vst [vmem:[#allocation2 + $0x58] sm:$0xff] %v406_v11  ;;  %v399_v13 = vmax.f32 %v383_v12, 0.0  ;;  %v220_v14 = vpop.f32.mrf.mxu2 }
  0xc5   :  { %v365_v15 = vpop.f32.mrf.mxu3 }
  0xc6   :  { %415 = vst [vmem:[#allocation2 + $0x20] sm:$0xff] %v399_v13  ;;  %v366_v16 = vadd.f32 %v365_v15, %v220_v14  ;;  %v202_v17 = vpop.f32.mrf.mxu0 }
  0xc7   :  { %v347_v18 = vpop.f32.mrf.mxu1 }
  0xc8   :  { %v391_v19 = vadd.f32 %v783_v33, %v366_v16  ;;  %v348_v20 = vadd.f32 %v347_v18, %v202_v17 }
  0xca   :  { %v407_v21 = vmax.f32 %v391_v19, 0.0  ;;  %v384_v22 = vadd.f32 %v783_v33, %v348_v20 }
  0xcc   :  { %423 = vst [vmem:[#allocation2 + $0x60] sm:$0xff] %v407_v21  ;;  %v400_v23 = vmax.f32 %v384_v22, 0.0  ;;  %v222_v24 = vpop.f32.mrf.mxu2 }
  0xcd   :  { %v367_v25 = vpop.f32.mrf.mxu3 }
  0xce   :  { %416 = vst [vmem:[#allocation2 + $0x28] sm:$0xff] %v400_v23  ;;  %v368_v26 = vadd.f32 %v367_v25, %v222_v24  ;;  %v205_v27 = vpop.f32.mrf.mxu0 }
  0xcf   :  { %v350_v28 = vpop.f32.mrf.mxu1 }
  0xd0   :  { %v392_v29 = vadd.f32 %v783_v33, %v368_v26  ;;  %v351_v30 = vadd.f32 %v350_v28, %v205_v27 }
  0xd2   :  { %v408_v31 = vmax.f32 %v392_v29, 0.0  ;;  %v385_v32 = vadd.f32 %v783_v33, %v351_v30 }
  0xd4   :  { %424 = vst [vmem:[#allocation2 + $0x68] sm:$0xff] %v408_v31  ;;  %v401_v34 = vmax.f32 %v385_v32, 0.0  ;;  %v225_v35 = vpop.f32.mrf.mxu2 }
  0xd5   :  { %v370_v36 = vpop.f32.mrf.mxu3 }
  0xd6   :  { %417 = vst [vmem:[#allocation2 + $0x30] sm:$0xff] %v401_v34  ;;  %v371_v37 = vadd.f32 %v370_v36, %v225_v35  ;;  %v207_v38 = vpop.f32.mrf.mxu0 }
  0xd7   :  { %v352_v39 = vpop.f32.mrf.mxu1 }
  0xd8   :  { %v393_v40 = vadd.f32 %v783_v33, %v371_v37  ;;  %v353_v41 = vadd.f32 %v352_v39, %v207_v38 }
  0xda   :  { %v409_v42 = vmax.f32 %v393_v40, 0.0  ;;  %v386_v43 = vadd.f32 %v783_v33, %v353_v41 }
  0xdc   :  { %425 = vst [vmem:[#allocation2 + $0x70] sm:$0xff] %v409_v42  ;;  %v402_v44 = vmax.f32 %v386_v43, 0.0  ;;  %v227_v45 = vpop.f32.mrf.mxu2 }
  0xdd   :  { %v372_v46 = vpop.f32.mrf.mxu3 }
  0xde   :  { %418 = vst [vmem:[#allocation2 + $0x38] sm:$0xff] %v402_v44  ;;  %v373_v47 = vadd.f32 %v372_v46, %v227_v45 }
  0xe0   :  { %v394_v48 = vadd.f32 %v783_v33, %v373_v47 }
  0xe2   :  { %v410_v49 = vmax.f32 %v394_v48, 0.0 }
  0xe4   :  { %426 = vst [vmem:[#allocation2 + $0x78] sm:$0xff] %v410_v49 }
  0xe5   :  { %439 = dma.vmem_to_hbm [thread:$0]  %s432_s2, 2048, %s434_s1, [#allocation3], %s652_s7, %s652_s7, %s653_s8  }
  0xe6   :  { %649 = dma.done.wait [#allocation3], 2048  }
  0xe7   :  { %650 = vsyncadd [#allocation3], 4294965248 }
  0xe8   :  { %444 = vsyncpa [#allocation3], 1 }

</bundles_post_ra>
